<compile_context>
chip_gen: v6e
topology: v6e:2x2x1
jax: 0.10.0
libtpu: 0.0.40
codegen_flags: <defaults>
</compile_context>

<pallas_src>
import functools
import math

import jax
import jax.numpy as jnp
from jax import lax
from jax.experimental import pallas as pl
from jax.experimental.pallas import tpu as pltpu

_EPS = 1e-12                        # matches F.normalize / the PyTorch default
_DN = (((1,), (1,)), ((), ()))      # nd,md->nm : contract feature dim of both operands


def _round_up(x, m):
    return ((x + m - 1) // m) * m


def _ntxent_kernel(rq_ref, ck_ref, pos_ref,          # inputs (bf16 rows, bf16 cols, f32 pos)
                   out_ref,                          # output: per-row loss partials
                   acc_ref,                          # VMEM scratch: denominator accumulator
                   *, inv_temp, n_valid, tq, tk, has_pad):
    qi = pl.program_id(0)
    ki = pl.program_id(1)
    n_k = pl.num_programs(1)

    @pl.when(ki == 0)
    def _init():
        acc_ref[...] = jnp.zeros_like(acc_ref)

    # One fused (tq, d) x (d, tk) matmul per step; f32 accumulation on the MXU.
    s = lax.dot_general(rq_ref[...], ck_ref[...], _DN,
                        preferred_element_type=jnp.float32)

    # Rows are unit-norm => s <= 1; shifting by -1 keeps exp() finite even for
    # very small temperatures (the +inv_temp shift is restored in the log).
    e = jnp.exp((s - 1.0) * inv_temp)
    acc_ref[...] += jnp.sum(e, axis=1, keepdims=True)

    # Masking corrections only where needed: tiles crossed by the diagonal and
    # (if the batch was padded) the last column tile.  The common path above
    # carries no iotas / compares / selects.
    row0 = qi * tq
    col0 = ki * tk
    diag_tile = jnp.logical_and(row0 < col0 + tk, col0 < row0 + tq)
    if has_pad:
        needs_fix = jnp.logical_or(diag_tile, ki == n_k - 1)
    else:
        needs_fix = diag_tile

    @pl.when(needs_fix)
    def _correct():
        row_g = row0 + lax.broadcasted_iota(jnp.int32, (tq, tk), 0)
        col_g = col0 + lax.broadcasted_iota(jnp.int32, (tq, tk), 1)
        drop = jnp.logical_or(col_g >= n_valid, row_g == col_g)
        acc_ref[...] -= jnp.sum(jnp.where(drop, e, 0.0), axis=1, keepdims=True)

    @pl.when(ki == n_k - 1)
    def _finalize():
        # denom = exp(inv_temp) * acc  ->  log(denom) = inv_temp + log(acc)
        # loss_r = log(denom) - pos_r * inv_temp
        per_row = jnp.log(acc_ref[...]) + inv_temp - pos_ref[...] * inv_temp
        rg = row0 + lax.broadcasted_iota(jnp.int32, (tq, 1), 0)
        out_ref[...] = jnp.where(rg < n_valid, per_row, 0.0)


def contrastive_loss(emb_i, emb_j, temperature=0.5, *,
                     block_q=None, block_k=None, matmul_dtype=jnp.bfloat16):
    assert emb_i.shape == emb_j.shape and emb_i.ndim == 2
    b, d = emb_i.shape
    n = 2 * b
    inv_temp = float(1.0 / float(temperature))

    # ---- tile selection ---------------------------------------------------
    n8 = _round_up(n, 8)
    if block_q is None:
        if n8 <= 128:
            block_q = n8
        else:
            tiles128 = pl.cdiv(n8, 128)
            # multiple of 128, capped at 512, keep >= 2 row tiles (megacore).
            block_q = 128 * max(1, min(4, tiles128 // 2))
    if block_k is None:
        block_k = min(block_q, 128)
    block_q = max(8, _round_up(int(block_q), 8))
    block_k = max(8, _round_up(int(block_k), 8))
    tq, tk = block_q, block_k

    lcm = tq * tk // math.gcd(tq, tk)
    n_pad = _round_up(n, lcm)
    d_pad = _round_up(d, 128)
    has_pad = n_pad > n

    # ---- wrapper-side prep: normalize in f32, positives in f32, bf16 reps --
    zi = emb_i.astype(jnp.float32)
    zj = emb_j.astype(jnp.float32)

    def _norm(x):
        ss = jnp.sum(x * x, axis=1, keepdims=True)
        return x * lax.rsqrt(jnp.maximum(ss, _EPS * _EPS))

    zi_n = _norm(zi)
    zj_n = _norm(zj)

    # positives[r] = <z_i[r], z_j[r]>, shared by both halves of the 2B rows.
    pos = jnp.sum(zi_n * zj_n, axis=1)                         # (B,)  f32
    pos = jnp.concatenate([pos, pos], axis=0)                  # (2B,)
    pos = jnp.pad(pos, (0, n_pad - n)).reshape(n_pad, 1)       # (n_pad, 1)

    reps = jnp.concatenate([zi_n, zj_n], axis=0)               # (2B, D) f32
    reps = jnp.pad(reps, ((0, n_pad - n), (0, d_pad - d)))
    reps = reps.astype(matmul_dtype)                           # bf16 stream

    grid_r = n_pad // tq
    grid_c = n_pad // tk

    kernel = functools.partial(
        _ntxent_kernel,
        inv_temp=inv_temp, n_valid=n, tq=tq, tk=tk, has_pad=has_pad)

    # ---- VMEM budget (bf16 inputs, double-buffered) -------------------------
    bpe = jnp.dtype(matmul_dtype).itemsize
    est = (2 * tq * d_pad * bpe            # row tiles (double-buffered)
           + 2 * tk * d_pad * bpe          # col tiles (double-buffered)
           + 4 * tq * tk * 4               # s / e / mask temporaries
           + 8 * tq * 4)                   # pos / acc / out blocks
    vmem_limit = int(min(max(2 * est, 16 * 2**20), 56 * 2**20))  # v7x-safe cap

    cost = pl.CostEstimate(
        flops=2 * n_pad * n_pad * d_pad,
        transcendentals=n_pad * n_pad + 2 * n_pad,
        bytes_accessed=(grid_r + 1) * n_pad * d_pad * bpe + 3 * n_pad * 4,
    )

    per_row = pl.pallas_call(
        kernel,
        out_shape=jax.ShapeDtypeStruct((n_pad, 1), jnp.float32),
        grid_spec=pltpu.PrefetchScalarGridSpec(
            num_scalar_prefetch=0,
            grid=(grid_r, grid_c),
            in_specs=[
                pl.BlockSpec((tq, d_pad), lambda qi, ki: (qi, 0)),  # row tile
                pl.BlockSpec((tk, d_pad), lambda qi, ki: (ki, 0)),  # col tile
                pl.BlockSpec((tq, 1), lambda qi, ki: (qi, 0)),      # positives
            ],
            out_specs=pl.BlockSpec((tq, 1), lambda qi, ki: (qi, 0)),
            scratch_shapes=[
                pltpu.VMEM((tq, 1), jnp.float32),                   # denom acc
            ],
        ),
        compiler_params=pltpu.CompilerParams(
            dimension_semantics=("parallel", "arbitrary"),
            vmem_limit_bytes=vmem_limit,
        ),
        cost_estimate=cost,
    )(reps, reps, pos)

    # Trivial final reduction of per-row partials (padded rows already zero).
    return jnp.sum(per_row) / (2.0 * b)


def _reference_loss(emb_i, emb_j, temperature=0.5):
    """Pure-JAX f32 reference replicating the PyTorch forward exactly."""
    def norm(x):
        return x / jnp.maximum(jnp.linalg.norm(x, axis=1, keepdims=True), 1e-12)

    b = emb_i.shape[0]
    reps = jnp.concatenate([norm(emb_i), norm(emb_j)], axis=0)
    sim = reps @ reps.T
    sim_ij = jnp.diagonal(sim, offset=b)
    sim_ji = jnp.diagonal(sim, offset=-b)
    positives = jnp.concatenate([sim_ij, sim_ji], axis=0)
    neg_mask = 1.0 - jnp.eye(2 * b, dtype=jnp.float32)
    nominator = jnp.exp(positives / temperature)
    denominator = jnp.sum(neg_mask * jnp.exp(sim / temperature), axis=1)
    return jnp.sum(-jnp.log(nominator / denominator)) / (2 * b)


if __name__ == "__main__":
    batch_size = 20
    hidden = 32
    temperature = 0.5

    key = jax.random.PRNGKey(0)
    k_i, k_j = jax.random.split(key)
    emb_i = jax.random.normal(k_i, (batch_size, hidden), dtype=jnp.float32)
    emb_j = jax.random.normal(k_j, (batch_size, hidden), dtype=jnp.float32)

    ref = _reference_loss(emb_i, emb_j, temperature)

    # Default tile selection (single tile for this tiny problem).
    loss_default = contrastive_loss(emb_i, emb_j, temperature)
    jax.block_until_ready(loss_default)
    assert jnp.allclose(loss_default, ref, rtol=2e-2, atol=2e-2), (loss_default, ref)

    # Small explicit tiles to exercise the tiled grid, padded columns and the
    # diagonal-correction path (2B=40 -> padded to 48, grid (3, 6)).
    loss_tiled = contrastive_loss(emb_i, emb_j, temperature, block_q=16, block_k=8)
    jax.block_until_ready(loss_tiled)
    assert jnp.allclose(loss_tiled, ref, rtol=2e-2, atol=2e-2), (loss_tiled, ref)

    print("KERNEL_OK")
</pallas_src>

<mosaic_0001>
module attributes {stable_mosaic.version = 11 : i64} {
  func.func @_ntxent_kernel(%arg0: i32, %arg1: i32, %arg2: memref<40x128xbf16, #tpu.memory_space<vmem>>, %arg3: memref<40x128xbf16, #tpu.memory_space<vmem>>, %arg4: memref<40x1xf32, #tpu.memory_space<vmem>>, %arg5: memref<40x1xf32, #tpu.memory_space<vmem>>, %arg6: memref<40x1xf32, #tpu.memory_space<vmem>>) attributes {dimension_semantics = [#tpu.dimension_semantics<parallel>, #tpu.dimension_semantics<arbitrary>], iteration_bounds = array<i64: 1, 1>, scalar_prefetch = 0 : i64, scratch_operands = 1 : i64, tpu.core_type = #tpu.core_type<tc>, window_params = [{transform_indices = @transform_0, window_bounds = array<i64: 40, 128>}, {transform_indices = @transform_1, window_bounds = array<i64: 40, 128>}, {transform_indices = @transform_2, window_bounds = array<i64: 40, 1>}, {transform_indices = @transform_3, window_bounds = array<i64: 40, 1>}]} {
    %c0_i32 = arith.constant 0 : i32
    %0 = arith.cmpi eq, %arg1, %c0_i32 : i32
    %1 = arith.extui %0 : i1 to i32
    %c0_i32_0 = arith.constant 0 : i32
    %2 = arith.cmpi ne, %1, %c0_i32_0 : i32
    scf.if %2 {
      %cst_17 = arith.constant 0.000000e+00 : f32
      %28 = vector.broadcast %cst_17 : f32 to vector<40x1xf32>
      %c0_18 = arith.constant 0 : index
      %c0_19 = arith.constant 0 : index
      %29 = vector.load %arg6[%c0_18, %c0_19] : memref<40x1xf32, #tpu.memory_space<vmem>>, vector<40x1xf32>
      tpu.vector_store %arg6[%c0_18, %c0_19], %28 {strides = array<i32>} : memref<40x1xf32, #tpu.memory_space<vmem>>, vector<40x1xf32>,
    } else {
    }
    %c0 = arith.constant 0 : index
    %c0_1 = arith.constant 0 : index
    %3 = vector.load %arg2[%c0, %c0_1] : memref<40x128xbf16, #tpu.memory_space<vmem>>, vector<40x128xbf16>
    %c0_2 = arith.constant 0 : index
    %c0_3 = arith.constant 0 : index
    %4 = vector.load %arg3[%c0_2, %c0_3] : memref<40x128xbf16, #tpu.memory_space<vmem>>, vector<40x128xbf16>
    %cst = arith.constant dense<0.000000e+00> : vector<40x40xf32>
    %5 = tpu.matmul %3, %4, %cst {dimension_numbers = #tpu.dot_dimension_numbers<[1], [1], [0], [0], [0, 0, 1, 0], [], []>} : vector<40x128xbf16>, vector<40x128xbf16>, vector<40x40xf32> -> vector<40x40xf32>
    %cst_4 = arith.constant 1.000000e+00 : f32
    %6 = vector.broadcast %cst_4 : f32 to vector<40x40xf32>
    %7 = arith.subf %5, %6 : vector<40x40xf32>
    %cst_5 = arith.constant 2.000000e+00 : f32
    %8 = vector.broadcast %cst_5 : f32 to vector<40x40xf32>
    %9 = arith.mulf %7, %8 : vector<40x40xf32>
    %10 = math.exp %9 : vector<40x40xf32>
    %c0_6 = arith.constant 0 : index
    %c0_7 = arith.constant 0 : index
    %11 = vector.load %arg6[%c0_6, %c0_7] : memref<40x1xf32, #tpu.memory_space<vmem>>, vector<40x1xf32>
    %cst_8 = arith.constant dense<0.000000e+00> : vector<40xf32>
    %12 = vector.multi_reduction <add>, %10, %cst_8 [1] : vector<40x40xf32> to vector<40xf32>
    %13 = vector.shape_cast %12 : vector<40xf32> to vector<40x1xf32>
    %14 = arith.addf %11, %13 : vector<40x1xf32>
    %c0_9 = arith.constant 0 : index
    %c0_10 = arith.constant 0 : index
    %15 = vector.load %arg6[%c0_9, %c0_10] : memref<40x1xf32, #tpu.memory_space<vmem>>, vector<40x1xf32>
    tpu.vector_store %arg6[%c0_9, %c0_10], %14 {strides = array<i32>} : memref<40x1xf32, #tpu.memory_space<vmem>>, vector<40x1xf32>,
    %c40_i32 = arith.constant 40 : i32
    %16 = arith.muli %arg0, %c40_i32 : i32
    %c40_i32_11 = arith.constant 40 : i32
    %17 = arith.muli %arg1, %c40_i32_11 : i32
    %c40_i32_12 = arith.constant 40 : i32
    %18 = arith.addi %17, %c40_i32_12 : i32
    %19 = arith.cmpi slt, %16, %18 : i32
    %c40_i32_13 = arith.constant 40 : i32
    %20 = arith.addi %16, %c40_i32_13 : i32
    %21 = arith.cmpi slt, %17, %20 : i32
    %22 = arith.andi %19, %21 : i1
    %23 = arith.extui %22 : i1 to i32
    %c0_i32_14 = arith.constant 0 : i32
    %24 = arith.cmpi ne, %23, %c0_i32_14 : i32
    scf.if %24 {
      %28 = tpu.iota {dimensions = array<i32: 0>} : vector<40x40xi32>
      %29 = vector.broadcast %16 : i32 to vector<40x40xi32>
      %30 = arith.addi %29, %28 : vector<40x40xi32>
      %31 = tpu.iota {dimensions = array<i32: 1>} : vector<40x40xi32>
      %32 = vector.broadcast %17 : i32 to vector<40x40xi32>
      %33 = arith.addi %32, %31 : vector<40x40xi32>
      %c40_i32_17 = arith.constant 40 : i32
      %34 = vector.broadcast %c40_i32_17 : i32 to vector<40x40xi32>
      %35 = arith.cmpi sge, %33, %34 : vector<40x40xi32>
      %36 = arith.cmpi eq, %30, %33 : vector<40x40xi32>
      %37 = arith.ori %35, %36 : vector<40x40xi1>
      %c0_18 = arith.constant 0 : index
      %c0_19 = arith.constant 0 : index
      %38 = vector.load %arg6[%c0_18, %c0_19] : memref<40x1xf32, #tpu.memory_space<vmem>>, vector<40x1xf32>
      %cst_20 = arith.constant 0.000000e+00 : f32
      %39 = vector.broadcast %cst_20 : f32 to vector<40x40xf32>
      %40 = arith.select %37, %10, %39 : vector<40x40xi1>, vector<40x40xf32>
      %cst_21 = arith.constant dense<0.000000e+00> : vector<40xf32>
      %41 = vector.multi_reduction <add>, %40, %cst_21 [1] : vector<40x40xf32> to vector<40xf32>
      %42 = vector.shape_cast %41 : vector<40xf32> to vector<40x1xf32>
      %43 = arith.subf %38, %42 : vector<40x1xf32>
      %c0_22 = arith.constant 0 : index
      %c0_23 = arith.constant 0 : index
      %44 = vector.load %arg6[%c0_22, %c0_23] : memref<40x1xf32, #tpu.memory_space<vmem>>, vector<40x1xf32>
      tpu.vector_store %arg6[%c0_22, %c0_23], %43 {strides = array<i32>} : memref<40x1xf32, #tpu.memory_space<vmem>>, vector<40x1xf32>,
    } else {
    }
    %c0_i32_15 = arith.constant 0 : i32
    %25 = arith.cmpi eq, %arg1, %c0_i32_15 : i32
    %26 = arith.extui %25 : i1 to i32
    %c0_i32_16 = arith.constant 0 : i32
    %27 = arith.cmpi ne, %26, %c0_i32_16 : i32
    scf.if %27 {
      %c0_17 = arith.constant 0 : index
      %c0_18 = arith.constant 0 : index
      %28 = vector.load %arg6[%c0_17, %c0_18] : memref<40x1xf32, #tpu.memory_space<vmem>>, vector<40x1xf32>
      %29 = math.log %28 : vector<40x1xf32>
      %cst_19 = arith.constant 2.000000e+00 : f32
      %30 = vector.broadcast %cst_19 : f32 to vector<40x1xf32>
      %31 = arith.addf %29, %30 : vector<40x1xf32>
      %c0_20 = arith.constant 0 : index
      %c0_21 = arith.constant 0 : index
      %32 = vector.load %arg4[%c0_20, %c0_21] : memref<40x1xf32, #tpu.memory_space<vmem>>, vector<40x1xf32>
      %cst_22 = arith.constant 2.000000e+00 : f32
      %33 = vector.broadcast %cst_22 : f32 to vector<40x1xf32>
      %34 = arith.mulf %32, %33 : vector<40x1xf32>
      %35 = arith.subf %31, %34 : vector<40x1xf32>
      %36 = tpu.iota {dimensions = array<i32: 0>} : vector<40x1xi32>
      %37 = vector.broadcast %16 : i32 to vector<40x1xi32>
      %38 = arith.addi %37, %36 : vector<40x1xi32>
      %c40_i32_23 = arith.constant 40 : i32
      %39 = vector.broadcast %c40_i32_23 : i32 to vector<40x1xi32>
      %40 = arith.cmpi slt, %38, %39 : vector<40x1xi32>
      %cst_24 = arith.constant 0.000000e+00 : f32
      %41 = vector.broadcast %cst_24 : f32 to vector<40x1xf32>
      %42 = arith.select %40, %35, %41 : vector<40x1xi1>, vector<40x1xf32>
      %c0_25 = arith.constant 0 : index
      %c0_26 = arith.constant 0 : index
      %43 = vector.load %arg5[%c0_25, %c0_26] : memref<40x1xf32, #tpu.memory_space<vmem>>, vector<40x1xf32>
      tpu.vector_store %arg5[%c0_25, %c0_26], %42 {strides = array<i32>} : memref<40x1xf32, #tpu.memory_space<vmem>>, vector<40x1xf32>,
    } else {
    }
    return
  }
  func.func @transform_0(%arg0: i32, %arg1: i32) -> (i32, i32) {
    %c0_i32 = arith.constant 0 : i32
    %c0_i32_0 = arith.constant 0 : i32
    return %arg0, %c0_i32 : i32, i32
  }
  func.func @transform_1(%arg0: i32, %arg1: i32) -> (i32, i32) {
    %c0_i32 = arith.constant 0 : i32
    %c0_i32_0 = arith.constant 0 : i32
    return %arg1, %c0_i32 : i32, i32
  }
  func.func @transform_2(%arg0: i32, %arg1: i32) -> (i32, i32) {
    %c0_i32 = arith.constant 0 : i32
    %c0_i32_0 = arith.constant 0 : i32
    return %arg0, %c0_i32 : i32, i32
  }
  func.func @transform_3(%arg0: i32, %arg1: i32) -> (i32, i32) {
    %c0_i32 = arith.constant 0 : i32
    %c0_i32_0 = arith.constant 0 : i32
    return %arg0, %c0_i32 : i32, i32
  }
}

</mosaic_0001>

<bundles_post_ra>
// kernel: tpu_custom_call.1
= control target key start
LH: loop header
LB: loop body
LE: loop exit
PB: predicated region body
PF: predicated region fallthrough
CT: control target
= control target key end

     0   :  { %v385_v0 = vmov 0.0   ;;  %vm386_vm0 = vmmov 0   ;;  %vm19_vm1 = vcmask 7168   ;;  %v185_v33 = vlaneseq  ;;  %s499_s1 = inlined_call_operand.vmem [shape: bf16[40,128], index: 1, kind: input, shape index: {}]   ;;  %s500_s0 = inlined_call_operand.vmem [shape: bf16[40,128], index: 0, kind: input, shape index: {}]   ;;  %s501_s2 = inlined_call_operand.vmem [shape: f32[40,1], index: 2, kind: input, shape index: {}]   ;;  %s502_s3 = inlined_call_operand.vmem [shape: f32[40,1], index: 3, kind: output, shape index: {}]  }
   0x1   :  { %333 = vmatprep.subr.bf16.mxu0 %v385_v0  ;;  %351 = vmatprep.subr.bf16.mxu1 %v385_v0  ;;  %v359_v1 = vld [vmem:[%s499_s1 + $0x10] ss:$0 sps:$4 sm:$0xff]   ;;  %v360_v2 = vld [vmem:[%s499_s1 + $0x8] sm:$0xff]   ;;  %v361_v3 = vld [vmem:[%s499_s1] sm:$0xff]   ;;  %22 = vst.msk [vmem:[#allocation2 + $0x10] sm:$0xff] %vm19_vm1, %v385_v0  ;;  %vm148_vm2 = vcmask 326656  }
   0x2   :  { %339 = vmatprep.mubr.msk.bf16.mxu0 %vm386_vm0, %v385_v0  ;;  %343 = vmatprep.mubr.msk.bf16.mxu1 %vm386_vm0, %v385_v0  ;;  %v362_v4 = vld [vmem:[%s500_s0] sm:$0xff]   ;;  %v363_v5 = vld [vmem:[%s500_s0 + $0x8] sm:$0xff]   ;;  %v364_v6 = vld [vmem:[%s500_s0 + $0x10] ss:$0 sps:$4 sm:$0xff]   ;;  %20 = vst.msk [vmem:[#allocation2] sm:$0xff] %vm19_vm1, %v385_v0  ;;  %v186_v35 = vshrl.u32 %v185_v33, 7 }
   0x3   :  { %334 = vmatpush3.bf16.xpose.msra.mxu0 %v359_v1  ;;  %354 = vmatpush3.bf16.xpose.msra.mxu1 %v359_v1  ;;  %21 = vst.msk [vmem:[#allocation2 + $0x8] sm:$0xff] %vm19_vm1, %v385_v0  ;;  %23 = vst.msk [vmem:[#allocation2 + $0x18] sm:$0xff] %vm19_vm1, %v385_v0  ;;  %v198_v36 = vand.u32 127, %v185_v33  ;;  %v270_v33 = vld [vmem:[%s501_s2] sm:$0xff]  ;;  %v273_v44 = vld [vmem:[%s501_s2 + $0x18] sm:$0xff] }
   0x4   :  { %335 = vmatprep.subr.bf16.mxu0 %v385_v0  ;;  %352 = vmatprep.subr.bf16.mxu1 %v385_v0  ;;  %24 = vst.msk [vmem:[#allocation2 + $0x20] sm:$0xff] %vm19_vm1, %v385_v0  ;;  %v187_v38 = vadd.s32 8, %v186_v35  ;;  %v188_v41 = vadd.s32 16, %v186_v35  ;;  %v189_v45 = vadd.s32 24, %v186_v35  ;;  %v190_v48 = vadd.s32 32, %v186_v35 }
   0x5   :  { %vm201_vm3 = vcmp.ge.s32.totalorder %v198_v36, 40  ;;  %vm202_vm4 = vcmp.eq.s32.totalorder %v186_v35, %v198_v36  ;;  %v275_v35 = vmul.f32 2.0, %v270_v33 }
   0x6   :  { %vm436_vm5 = vmor %vm201_vm3, %vm202_vm4  ;;  %vm203_vm6 = vcmp.eq.s32.totalorder %v187_v38, %v198_v36  ;;  %vm204_vm7 = vcmp.eq.s32.totalorder %v188_v41, %v198_v36  ;;  %vm205_vm10 = vcmp.eq.s32.totalorder %v189_v45, %v198_v36  ;;  %vm206_vm11 = vcmp.eq.s32.totalorder %v190_v48, %v198_v36  ;;  %v271_v38 = vld [vmem:[%s501_s2 + $0x8] sm:$0xff] }
   0x7   :  { %vm208_vm8 = vmor %vm201_vm3, %vm203_vm6 }
   0x8   :  { %vm209_vm9 = vmor %vm201_vm3, %vm204_vm7  ;;  %v145_v63 = vld [vmem:[#allocation2 + $0x10] sm:$0xff] }
   0x9   :  { %vm210_vm12 = vmor %vm201_vm3, %vm205_vm10  ;;  %v143_v62 = vld [vmem:[#allocation2] sm:$0xff] }
   0xa   :  { %vm211_vm13 = vmor %vm201_vm3, %vm206_vm11 }
   0xb   :  { %336 = vmatpush3.bf16.xpose.msra.mxu0 %v360_v2  ;;  %355 = vmatpush3.bf16.xpose.msra.mxu1 %v360_v2 }
   0xc   :  { %337 = vmatprep.subr.bf16.mxu0 %v385_v0  ;;  %353 = vmatprep.subr.bf16.mxu1 %v385_v0 }
  0x13   :  { %338 = vmatpush3.bf16.xpose.msra.mxu0 %v361_v3  ;;  %356 = vmatpush3.bf16.xpose.msra.mxu1 %v361_v3 }
  0x1a   :  { %340 = vmatmul.mubr.bf16.vlgmr.msra.gmra.mxu0 %v362_v4  ;;  %344 = vmatmul.mubr.bf16.vlgmr.msra.gmra.mxu1 %v363_v5  ;;  %v144_v4 = vld [vmem:[#allocation2 + $0x8] sm:$0xff]  ;;  %v146_v5 = vld [vmem:[#allocation2 + $0x18] sm:$0xff] }
  0x1b   :  { %347 = vmatprep.mubr.msk.bf16.mxu1 %vm386_vm0, %v385_v0 }
  0x22   :  { %348 = vmatmul.mubr.bf16.gmra.mxu1 %v364_v6 }
  0xda   :  { %v101_v7 = vpop.f32.mrf.mxu0  ;;  %v109_v8 = vpop.f32.mrf.mxu1 }
  0xdb   :  { %v322_v9 = vadd.f32 -1.0, %v101_v7  ;;  %v324_v10 = vadd.f32 -1.0, %v109_v8 }
  0xdc   :  { %v341_v11 = vpop.f32.mrf.mxu0  ;;  %v345_v12 = vpop.f32.mrf.mxu1 }
  0xdd   :  { %v128_v13 = vmul.f32 2.0, %v322_v9  ;;  %v130_v14 = vmul.f32 2.0, %v324_v10  ;;  %v147_v10 = vld [vmem:[#allocation2 + $0x20] sm:$0xff] }
  0xde   :  { %v104_v15 = vpop.f32.mrf.mxu0  ;;  %v112_v16 = vpop.f32.mrf.mxu1 }
  0xdf   :  { %v133_v17 = vmul.f32 1.442695, %v128_v13  ;;  %v137_v18 = vmul.f32 1.442695, %v130_v14  ;;  %v323_v19 = vadd.f32 -1.0, %v104_v15  ;;  %v325_v20 = vadd.f32 -1.0, %v112_v16 }
  0xe0   :  { %v342_v21 = vpop.f32.mrf.mxu0  ;;  %v346_v22 = vpop.f32.mrf.mxu1 }
  0xe1   :  { %365 = vpow2.f32 %v133_v17  ;;  %v129_v23 = vmul.f32 2.0, %v323_v19  ;;  %v131_v24 = vmul.f32 2.0, %v325_v20 }
  0xe2   :  { %367 = vpow2.f32 %v137_v18  ;;  %v117_v25 = vpop.f32.mrf.mxu1 }
  0xe3   :  { %v135_v26 = vmul.f32 1.442695, %v129_v23  ;;  %v139_v27 = vmul.f32 1.442695, %v131_v24  ;;  %v326_v28 = vadd.f32 -1.0, %v117_v25 }
  0xe4   :  { %v349_v29 = vpop.f32.mrf.mxu1 }
  0xe5   :  { %369 = vpow2.f32 %v135_v26  ;;  %v132_v30 = vmul.f32 2.0, %v326_v28 }
  0xe6   :  { %371 = vpow2.f32 %v139_v27  ;;  %v120_v31 = vpop.f32.mrf.mxu1 }
  0xe7   :  { %v141_v32 = vmul.f32 1.442695, %v132_v30 }
  0xe8   :  { %v350_v34 = vpop.f32.mrf.mxu1 }
  0xe9   :  { %373 = vpow2.f32 %v141_v32 }
  0xee   :  { %v366_v37 = vpop.eup %365 }
  0xef   :  { %v368_v39 = vpop.eup %367  ;;  %v149_v40 = vsel %vm148_vm2, %v366_v37, 0.0  ;;  %v217_v50 = vsel %vm436_vm5, %v366_v37, 0.0  ;;  %v272_v37 = vld [vmem:[%s501_s2 + $0x10] sm:$0xff] }
  0xf0   :  { %v155_v42 = vsel %vm148_vm2, %v368_v39, 0.0  ;;  %150 = vadd.xlane.f32.xlu0 %v149_v40  ;;  %v222_v53 = vsel %vm148_vm2, %v217_v50, 0.0  ;;  %v219_v55 = vsel %vm209_vm9, %v368_v39, 0.0  ;;  %v274_v50 = vld [vmem:[%s501_s2 + $0x20] sm:$0xff] }
  0xf1   :  { %156 = vadd.xlane.f32.xlu1 %v155_v42  ;;  %v228_v57 = vsel %vm148_vm2, %v219_v55, 0.0  ;;  %v277_v42 = vmul.f32 2.0, %v272_v37 }
  0xf2   :  { %v370_v43 = vpop.eup %369 }
  0xf3   :  { %v372_v46 = vpop.eup %371  ;;  %v152_v47 = vsel %vm148_vm2, %v370_v43, 0.0  ;;  %v218_v54 = vsel %vm208_vm8, %v370_v43, 0.0 }
  0xf4   :  { %v158_v49 = vsel %vm148_vm2, %v372_v46, 0.0  ;;  %153 = vadd.xlane.f32.xlu0 %v152_v47  ;;  %v225_v56 = vsel %vm148_vm2, %v218_v54, 0.0  ;;  %v220_v58 = vsel %vm210_vm12, %v372_v46, 0.0  ;;  %v276_v46 = vmul.f32 2.0, %v271_v38 }
  0xf5   :  { %159 = vadd.xlane.f32.xlu1 %v158_v49  ;;  %v231_v60 = vsel %vm148_vm2, %v220_v58, 0.0 }
  0xf6   :  { %v374_v51 = vpop.eup %373 }
  0xf7   :  { %v161_v52 = vsel %vm148_vm2, %v374_v51, 0.0  ;;  %v221_v59 = vsel %vm211_vm13, %v374_v51, 0.0 }
  0xf8   :  { %162 = vadd.xlane.f32.xlu0 %v161_v52  ;;  %v234_v61 = vsel %vm148_vm2, %v221_v59, 0.0  ;;  %v278_v52 = vmul.f32 2.0, %v273_v44 }
  0xf9   :  { %223 = vadd.xlane.f32.xlu1 %v222_v53 }
  0xfc   :  { %226 = vadd.xlane.f32.xlu0 %v225_v56 }
  0xfd   :  { %229 = vadd.xlane.f32.xlu1 %v228_v57  ;;  %v279_v57 = vmul.f32 2.0, %v274_v50 }
 0x100   :  { %232 = vadd.xlane.f32.xlu0 %v231_v60 }
 0x101   :  { %235 = vadd.xlane.f32.xlu1 %v234_v61 }
 0x179   :  { %v151_v0 = vpop.xlane.xlu0 %150 }
 0x17a   :  { %v157_v1 = vpop.xlane.xlu1 %156  ;;  %v164_v2 = vadd.f32 %v151_v0, %v143_v62 }
 0x17b   :  { %v166_v3 = vadd.f32 %v157_v1, %v145_v63 }
 0x17c   :  { %170 = vst.msk [vmem:[#allocation2] sm:$0xff] %vm19_vm1, %v164_v2 }
 0x17d   :  { %172 = vst.msk [vmem:[#allocation2 + $0x10] sm:$0xff] %vm19_vm1, %v166_v3  ;;  %v154_v6 = vpop.xlane.xlu0 %153 }
 0x17e   :  { %v160_v7 = vpop.xlane.xlu1 %159  ;;  %v165_v8 = vadd.f32 %v154_v6, %v144_v4 }
 0x17f   :  { %v167_v9 = vadd.f32 %v160_v7, %v146_v5 }
 0x180   :  { %171 = vst.msk [vmem:[#allocation2 + $0x8] sm:$0xff] %vm19_vm1, %v165_v8 }
 0x181   :  { %173 = vst.msk [vmem:[#allocation2 + $0x18] sm:$0xff] %vm19_vm1, %v167_v9  ;;  %v163_v11 = vpop.xlane.xlu0 %162 }
 0x182   :  { %v224_v12 = vpop.xlane.xlu1 %223  ;;  %v168_v13 = vadd.f32 %v163_v11, %v147_v10 }
 0x183   :  { %v212_v14 = vld [vmem:[#allocation2] sm:$0xff] }
 0x184   :  { %v237_v15 = vsub.f32 %v212_v14, %v224_v12  ;;  %174 = vst.msk [vmem:[#allocation2 + $0x20] sm:$0xff] %vm19_vm1, %v168_v13  ;;  %v214_v17 = vld [vmem:[#allocation2 + $0x10] sm:$0xff] }
 0x185   :  { %v227_v16 = vpop.xlane.xlu0 %226 }
 0x186   :  { %242 = vst.msk [vmem:[#allocation2] sm:$0xff] %vm19_vm1, %v237_v15  ;;  %v230_v18 = vpop.xlane.xlu1 %229 }
 0x187   :  { %v239_v19 = vsub.f32 %v214_v17, %v230_v18  ;;  %v213_v20 = vld [vmem:[#allocation2 + $0x8] sm:$0xff] }
 0x188   :  { %v238_v21 = vsub.f32 %v213_v20, %v227_v16  ;;  %v215_v22 = vld [vmem:[#allocation2 + $0x18] sm:$0xff] }
 0x189   :  { %244 = vst.msk [vmem:[#allocation2 + $0x10] sm:$0xff] %vm19_vm1, %v239_v19  ;;  %v233_v23 = vpop.xlane.xlu0 %232 }
 0x18a   :  { %243 = vst.msk [vmem:[#allocation2 + $0x8] sm:$0xff] %vm19_vm1, %v238_v21  ;;  %v240_v24 = vsub.f32 %v215_v22, %v233_v23  ;;  %v236_v25 = vpop.xlane.xlu1 %235 }
 0x18b   :  { %v216_v26 = vld [vmem:[#allocation2 + $0x20] sm:$0xff] }
 0x18c   :  { %v241_v27 = vsub.f32 %v216_v26, %v236_v25  ;;  %245 = vst.msk [vmem:[#allocation2 + $0x18] sm:$0xff] %vm19_vm1, %v240_v24 }
 0x18d   :  { %v250_v28 = vld [vmem:[#allocation2] sm:$0xff] }
 0x18e   :  { %375 = vlog2.f32 %v250_v28  ;;  %246 = vst.msk [vmem:[#allocation2 + $0x20] sm:$0xff] %vm19_vm1, %v241_v27 }
 0x190   :  { %v252_v29 = vld [vmem:[#allocation2 + $0x10] sm:$0xff] }
 0x191   :  { %377 = vlog2.f32 %v252_v29  ;;  %v251_v30 = vld [vmem:[#allocation2 + $0x8] sm:$0xff] }
 0x192   :  { %379 = vlog2.f32 %v251_v30 }
 0x193   :  { %v253_v31 = vld [vmem:[#allocation2 + $0x18] sm:$0xff] }
 0x194   :  { %381 = vlog2.f32 %v253_v31 }
 0x195   :  { %v254_v32 = vld [vmem:[#allocation2 + $0x20] sm:$0xff] }
 0x196   :  { %383 = vlog2.f32 %v254_v32 }
 0x19b   :  { %v376_v34 = vpop.eup %375 }
 0x19c   :  { %v256_v36 = vmul.f32 0.6931472, %v376_v34 }
 0x19e   :  { %v378_v39 = vpop.eup %377  ;;  %v265_v40 = vadd.f32 2.0, %v256_v36 }
 0x19f   :  { %v380_v41 = vpop.eup %379  ;;  %v260_v43 = vmul.f32 0.6931472, %v378_v39 }
 0x1a0   :  { %v280_v45 = vsub.f32 %v265_v40, %v275_v35  ;;  %v258_v47 = vmul.f32 0.6931472, %v380_v41 }
 0x1a1   :  { %v382_v48 = vpop.eup %381  ;;  %v267_v49 = vadd.f32 2.0, %v260_v43 }
 0x1a2   :  { %307 = vst.msk [vmem:[%s502_s3] sm:$0xff] %vm19_vm1, %v280_v45  ;;  %v266_v51 = vadd.f32 2.0, %v258_v47  ;;  %v262_v53 = vmul.f32 0.6931472, %v382_v48 }
 0x1a3   :  { %v384_v54 = vpop.eup %383  ;;  %v282_v55 = vsub.f32 %v267_v49, %v277_v42 }
 0x1a4   :  { %v281_v56 = vsub.f32 %v266_v51, %v276_v46  ;;  %v264_v58 = vmul.f32 0.6931472, %v384_v54  ;;  %v268_v59 = vadd.f32 2.0, %v262_v53 }
 0x1a5   :  { %309 = vst.msk [vmem:[%s502_s3 + $0x10] sm:$0xff] %vm19_vm1, %v282_v55 }
 0x1a6   :  { %308 = vst.msk [vmem:[%s502_s3 + $0x8] sm:$0xff] %vm19_vm1, %v281_v56  ;;  %v269_v60 = vadd.f32 2.0, %v264_v58  ;;  %v283_v61 = vsub.f32 %v268_v59, %v278_v52 }
 0x1a8   :  { %v284_v62 = vsub.f32 %v269_v60, %v279_v57  ;;  %310 = vst.msk [vmem:[%s502_s3 + $0x18] sm:$0xff] %vm19_vm1, %v283_v61 }
 0x1aa   :  { %311 = vst.msk [vmem:[%s502_s3 + $0x20] sm:$0xff] %vm19_vm1, %v284_v62 }

</bundles_post_ra>
